<compile_context>
chip_gen: v5e
topology: v5e:2x2
jax: 0.10.0
libtpu: 0.0.40
codegen_flags: <defaults>
</compile_context>

<pallas_src>
import functools

import jax
import jax.numpy as jnp
from jax import lax
from jax.experimental import pallas as pl
from jax.experimental.pallas import tpu as pltpu

EV_EMBED = 16
BET_EMBED = 64


def _round_up(x, m):
    return ((x + m - 1) // m) * m


def _deep_ev_fwd_kernel(feat_ref,
                        w_ev1, b_ev1, w_ev2, b_ev2,
                        w_b1s, w_b1o, b_b1, w_b2, b_b2,
                        w_c1x, w_c1y, b_c1, w_c2, b_c2, w_c3, b_c3,
                        w_head,
                        u_ref, stats_ref,
                        *, batch, tile_batch):
    f32 = jnp.float32
    relu = lambda t: jnp.maximum(t, 0.0)

    # Row-validity mask for the (possibly padded) last batch tile.
    i = pl.program_id(0)
    row = i * tile_batch + lax.broadcasted_iota(jnp.int32, (tile_batch, 1), 0)
    valid = row < batch                                       # (TB, 1) bool

    feat = jnp.where(valid, feat_ref[...].astype(f32), 0.0)   # (TB, 1+nbets)
    he = feat[:, 0:1]                                         # (TB, 1)
    bets = feat[:, 1:]                                        # (TB, nbets)

    # --- EV branch --------------------------------------------------------
    # ev1 has in_features == 1, so x @ W is just a broadcast multiply.
    x = relu(he * w_ev1[...] + b_ev1[...])                                    # (TB, 16)
    x = relu(jnp.dot(x, w_ev2[...], preferred_element_type=f32) + b_ev2[...] + x)

    # --- Bet branch ---------------------------------------------------------
    # torch.cat([bet_size, bet_occurred], dim=1) @ W computed as a split matmul.
    bet_size = jnp.clip(bets, -1000000.0, 1000000.0)
    bet_occurred = jnp.where(bets != 0.0, 1.0, 0.0)
    y = relu(jnp.dot(bet_size, w_b1s[...], preferred_element_type=f32)
             + jnp.dot(bet_occurred, w_b1o[...], preferred_element_type=f32)
             + b_b1[...])                                                     # (TB, 64)
    y = relu(jnp.dot(y, w_b2[...], preferred_element_type=f32) + b_b2[...] + y)

    # --- Combined trunk -----------------------------------------------------
    # torch.cat([x, y], dim=1) @ comb1.W also done as a split matmul.
    z = relu(jnp.dot(x, w_c1x[...], preferred_element_type=f32)
             + jnp.dot(y, w_c1y[...], preferred_element_type=f32)
             + b_c1[...])                                                     # (TB, 64)
    z = relu(jnp.dot(z, w_c2[...], preferred_element_type=f32) + b_c2[...] + z)
    z = relu(jnp.dot(z, w_c3[...], preferred_element_type=f32) + b_c3[...] + z)

    # Unnormalized head product; the global mean/std is folded in afterwards
    # (out = inv_std * u + shift), so z never leaves VMEM.
    u = jnp.dot(z, w_head[...], preferred_element_type=f32)
    u_ref[...] = u.astype(u_ref.dtype)

    # Per-tile, per-feature partial sums for the global mean/std (sum & sum-sq
    # in one pass over z; padded rows are masked out).
    zm = jnp.where(valid, z, 0.0)
    psum = jnp.sum(zm, axis=0, keepdims=True)          # (1, 64)
    psumsq = jnp.sum(zm * zm, axis=0, keepdims=True)   # (1, 64)
    sub = lax.broadcasted_iota(jnp.int32, (2, zm.shape[1]), 0)
    stats_ref[0] = jnp.where(sub == 0, psum, psumsq)   # row0=sum, row1=sumsq


def deep_ev_forward(hand_ev, bets, params, *, tile_batch=512):
    """hand_ev: (B, 1) f32, bets: (B, nbets) f32, params: flat tuple of weights."""
    (w_ev1, b_ev1, w_ev2, b_ev2,
     w_b1s, w_b1o, b_b1, w_b2, b_b2,
     w_c1x, w_c1y, b_c1, w_c2, b_c2, w_c3, b_c3,
     w_head, b_head) = params

    B = hand_ev.shape[0]
    nbets = bets.shape[1]
    ev_emb = w_ev1.shape[1]
    emb = w_head.shape[0]
    nactions = w_head.shape[1]

    # Batch tile: multiple of 8 sublanes, capped by the requested tile size.
    tb = _round_up(min(int(tile_batch), _round_up(B, 8)), 8)
    ntiles = pl.cdiv(B, tb)

    # Single fused, lane-padded input slab: [hand_ev | bets].
    feat = jnp.concatenate(
        [hand_ev.astype(jnp.float32), bets.astype(jnp.float32)], axis=1)

    weights = (w_ev1, b_ev1, w_ev2, b_ev2,
               w_b1s, w_b1o, b_b1, w_b2, b_b2,
               w_c1x, w_c1y, b_c1, w_c2, b_c2, w_c3, b_c3,
               w_head)

    in_specs = [pl.BlockSpec((tb, 1 + nbets), lambda i: (i, 0))]
    # Weights / biases: full block, constant index_map -> resident across tiles.
    in_specs += [pl.BlockSpec(w.shape, lambda i, nd=w.ndim: (0,) * nd)
                 for w in weights]

    out_specs = [
        pl.BlockSpec((tb, nactions), lambda i: (i, 0)),        # u = z @ W_head
        pl.BlockSpec((1, 2, emb), lambda i: (i, 0, 0)),        # per-tile stats
    ]
    out_shape = [
        jax.ShapeDtypeStruct((B, nactions), jnp.float32),
        jax.ShapeDtypeStruct((ntiles, 2, emb), jnp.float32),
    ]

    mac = (ev_emb + ev_emb * ev_emb
           + 2 * nbets * emb + emb * emb
           + (ev_emb + emb) * emb + 2 * emb * emb
           + emb * nactions)
    cost = pl.CostEstimate(
        flops=2 * B * mac,
        transcendentals=0,
        bytes_accessed=4 * (B * (1 + nbets) + B * nactions
                            + ntiles * 2 * emb
                            + sum(int(w.size) for w in weights)))

    kernel = functools.partial(_deep_ev_fwd_kernel, batch=B, tile_batch=tb)

    u, stats = pl.pallas_call(
        kernel,
        grid=(ntiles,),
        in_specs=in_specs,
        out_specs=out_specs,
        out_shape=out_shape,
        compiler_params=pltpu.CompilerParams(
            dimension_semantics=("parallel",),
            vmem_limit_bytes=32 * 1024 * 1024),
        cost_estimate=cost,
    )(feat, *weights)

    # --- Finalize global normalization (torch.mean / torch.std, ddof=1) -----
    # Tiny reduction over (ntiles, 2, emb); computed in f32.  Note: the
    # sum/sum-of-squares identity can lose a bit or two if mean >> std.
    n = B * emb
    total = jnp.sum(stats[:, 0, :])
    total_sq = jnp.sum(stats[:, 1, :])
    mean = total / n
    var = (total_sq - n * mean * mean) / (n - 1)
    inv_std = lax.rsqrt(var)          # EUP rsqrt instead of a divide by sqrt
    # ((z - mean) * inv_std) @ W + b == inv_std*(z@W) + (b - mean*inv_std*colsum(W))
    shift = b_head - mean * inv_std * jnp.sum(w_head, axis=0, keepdims=True)
    return u * inv_std + shift


def init_params(key, nbets, nactions, ev_embed=EV_EMBED, bet_embed=BET_EMBED):
    """Deterministic PyTorch-style Linear init: U(-1/sqrt(fan_in), 1/sqrt(fan_in))."""
    def linear(k, fan_in, fan_out):
        k1, k2 = jax.random.split(k)
        bound = 1.0 / float(fan_in) ** 0.5
        w = jax.random.uniform(k1, (fan_in, fan_out), jnp.float32, -bound, bound)
        b = jax.random.uniform(k2, (1, fan_out), jnp.float32, -bound, bound)
        return w, b

    keys = jax.random.split(key, 8)
    w_ev1, b_ev1 = linear(keys[0], 1, ev_embed)
    w_ev2, b_ev2 = linear(keys[1], ev_embed, ev_embed)
    w_bet1, b_bet1 = linear(keys[2], nbets * 2, bet_embed)
    w_bet2, b_bet2 = linear(keys[3], bet_embed, bet_embed)
    w_c1, b_c1 = linear(keys[4], ev_embed + bet_embed, bet_embed)
    w_c2, b_c2 = linear(keys[5], bet_embed, bet_embed)
    w_c3, b_c3 = linear(keys[6], bet_embed, bet_embed)
    w_head, b_head = linear(keys[7], bet_embed, nactions)
    # Split concat-consuming weights so the kernel never concatenates along lanes.
    w_b1s, w_b1o = w_bet1[:nbets], w_bet1[nbets:]
    w_c1x, w_c1y = w_c1[:ev_embed], w_c1[ev_embed:]
    return (w_ev1, b_ev1, w_ev2, b_ev2,
            w_b1s, w_b1o, b_bet1, w_bet2, b_bet2,
            w_c1x, w_c1y, b_c1, w_c2, b_c2, w_c3, b_c3,
            w_head, b_head)


def _reference_forward(hand_ev, bets, params):
    """Plain-JAX reference mirroring the PyTorch forward, for validation."""
    (w_ev1, b_ev1, w_ev2, b_ev2,
     w_b1s, w_b1o, b_b1, w_b2, b_b2,
     w_c1x, w_c1y, b_c1, w_c2, b_c2, w_c3, b_c3,
     w_head, b_head) = params
    relu = lambda t: jnp.maximum(t, 0.0)
    x = relu(hand_ev @ w_ev1 + b_ev1)
    x = relu(x @ w_ev2 + b_ev2 + x)
    bet_size = jnp.clip(bets, -1e6, 1e6)
    bet_occ = (bets != 0.0).astype(jnp.float32)
    bet_feats = jnp.concatenate([bet_size, bet_occ], axis=1)
    w_b1 = jnp.concatenate([w_b1s, w_b1o], axis=0)
    y = relu(bet_feats @ w_b1 + b_b1)
    y = relu(y @ w_b2 + b_b2 + y)
    z = jnp.concatenate([x, y], axis=1)
    w_c1 = jnp.concatenate([w_c1x, w_c1y], axis=0)
    z = relu(z @ w_c1 + b_c1)
    z = relu(z @ w_c2 + b_c2 + z)
    z = relu(z @ w_c3 + b_c3 + z)
    z = (z - jnp.mean(z)) / jnp.std(z, ddof=1)
    return z @ w_head + b_head


if __name__ == "__main__":
    B, NBETS, NACTIONS = 20, 4, 6
    TILE = 8  # small tile so the demo exercises multi-tile + partial-tile masking

    key = jax.random.PRNGKey(0)
    k_he, k_bets, k_mask, k_params = jax.random.split(key, 4)

    hand_ev = jax.random.uniform(k_he, (B, 1), jnp.float32)            # (B, 1)
    bets = jax.random.normal(k_bets, (B, NBETS), jnp.float32) * 10.0
    # zero out some bets so bet_occurred = bets.ne(0) is exercised
    bets = bets * jax.random.bernoulli(k_mask, 0.7, (B, NBETS)).astype(jnp.float32)

    params = init_params(k_params, NBETS, NACTIONS)

    out = deep_ev_forward(hand_ev, bets, params, tile_batch=TILE)
    out = jax.block_until_ready(out)

    ref = _reference_forward(hand_ev, bets, params)
    assert out.shape == (B, NACTIONS)
    assert jnp.allclose(out, ref, atol=2e-4, rtol=2e-4), (out, ref)

    print("KERNEL_OK")
</pallas_src>

<mosaic_0001>
module attributes {stable_mosaic.version = 11 : i64} {
  func.func @_deep_ev_fwd_kernel(%arg0: i32, %arg1: memref<8x5xf32, #tpu.memory_space<vmem>>, %arg2: memref<1x16xf32, #tpu.memory_space<vmem>>, %arg3: memref<1x16xf32, #tpu.memory_space<vmem>>, %arg4: memref<16x16xf32, #tpu.memory_space<vmem>>, %arg5: memref<1x16xf32, #tpu.memory_space<vmem>>, %arg6: memref<4x64xf32, #tpu.memory_space<vmem>>, %arg7: memref<4x64xf32, #tpu.memory_space<vmem>>, %arg8: memref<1x64xf32, #tpu.memory_space<vmem>>, %arg9: memref<64x64xf32, #tpu.memory_space<vmem>>, %arg10: memref<1x64xf32, #tpu.memory_space<vmem>>, %arg11: memref<16x64xf32, #tpu.memory_space<vmem>>, %arg12: memref<64x64xf32, #tpu.memory_space<vmem>>, %arg13: memref<1x64xf32, #tpu.memory_space<vmem>>, %arg14: memref<64x64xf32, #tpu.memory_space<vmem>>, %arg15: memref<1x64xf32, #tpu.memory_space<vmem>>, %arg16: memref<64x64xf32, #tpu.memory_space<vmem>>, %arg17: memref<1x64xf32, #tpu.memory_space<vmem>>, %arg18: memref<64x6xf32, #tpu.memory_space<vmem>>, %arg19: memref<8x6xf32, #tpu.memory_space<vmem>>, %arg20: memref<1x2x64xf32, #tpu.memory_space<vmem>>) attributes {dimension_semantics = [#tpu.dimension_semantics<parallel>], iteration_bounds = array<i64: 3>, scalar_prefetch = 0 : i64, scratch_operands = 0 : i64, tpu.core_type = #tpu.core_type<tc>, window_params = [{transform_indices = @transform_0, window_bounds = array<i64: 8, 5>}, {pipeline_mode = #tpu.pipeline_mode<synchronous>, transform_indices = @transform_1, window_bounds = array<i64: 1, 16>}, {pipeline_mode = #tpu.pipeline_mode<synchronous>, transform_indices = @transform_2, window_bounds = array<i64: 1, 16>}, {pipeline_mode = #tpu.pipeline_mode<synchronous>, transform_indices = @transform_3, window_bounds = array<i64: 16, 16>}, {pipeline_mode = #tpu.pipeline_mode<synchronous>, transform_indices = @transform_4, window_bounds = array<i64: 1, 16>}, {pipeline_mode = #tpu.pipeline_mode<synchronous>, transform_indices = @transform_5, window_bounds = array<i64: 4, 64>}, {pipeline_mode = #tpu.pipeline_mode<synchronous>, transform_indices = @transform_6, window_bounds = array<i64: 4, 64>}, {pipeline_mode = #tpu.pipeline_mode<synchronous>, transform_indices = @transform_7, window_bounds = array<i64: 1, 64>}, {pipeline_mode = #tpu.pipeline_mode<synchronous>, transform_indices = @transform_8, window_bounds = array<i64: 64, 64>}, {pipeline_mode = #tpu.pipeline_mode<synchronous>, transform_indices = @transform_9, window_bounds = array<i64: 1, 64>}, {pipeline_mode = #tpu.pipeline_mode<synchronous>, transform_indices = @transform_10, window_bounds = array<i64: 16, 64>}, {pipeline_mode = #tpu.pipeline_mode<synchronous>, transform_indices = @transform_11, window_bounds = array<i64: 64, 64>}, {pipeline_mode = #tpu.pipeline_mode<synchronous>, transform_indices = @transform_12, window_bounds = array<i64: 1, 64>}, {pipeline_mode = #tpu.pipeline_mode<synchronous>, transform_indices = @transform_13, window_bounds = array<i64: 64, 64>}, {pipeline_mode = #tpu.pipeline_mode<synchronous>, transform_indices = @transform_14, window_bounds = array<i64: 1, 64>}, {pipeline_mode = #tpu.pipeline_mode<synchronous>, transform_indices = @transform_15, window_bounds = array<i64: 64, 64>}, {pipeline_mode = #tpu.pipeline_mode<synchronous>, transform_indices = @transform_16, window_bounds = array<i64: 1, 64>}, {pipeline_mode = #tpu.pipeline_mode<synchronous>, transform_indices = @transform_17, window_bounds = array<i64: 64, 6>}, {transform_indices = @transform_18, window_bounds = array<i64: 8, 6>}, {transform_indices = @transform_19, window_bounds = array<i64: 1, 2, 64>}]} {
    %c8_i32 = arith.constant 8 : i32
    %0 = arith.muli %arg0, %c8_i32 : i32
    %1 = tpu.iota {dimensions = array<i32: 0>} : vector<8x1xi32>
    %2 = vector.broadcast %0 : i32 to vector<8x1xi32>
    %3 = arith.addi %2, %1 : vector<8x1xi32>
    %c20_i32 = arith.constant 20 : i32
    %4 = vector.broadcast %c20_i32 : i32 to vector<8x1xi32>
    %5 = arith.cmpi slt, %3, %4 : vector<8x1xi32>
    %c0 = arith.constant 0 : index
    %c0_0 = arith.constant 0 : index
    %6 = vector.load %arg1[%c0, %c0_0] : memref<8x5xf32, #tpu.memory_space<vmem>>, vector<8x5xf32>
    %cst = arith.constant 0.000000e+00 : f32
    %7 = vector.shape_cast %5 : vector<8x1xi1> to vector<8x1xi1>
    %8 = vector.broadcast %7 : vector<8x1xi1> to vector<8x5xi1>
    %9 = vector.broadcast %cst : f32 to vector<8x5xf32>
    %10 = arith.select %8, %6, %9 : vector<8x5xi1>, vector<8x5xf32>
    %11 = vector.extract_strided_slice %10 {offsets = [0, 0], sizes = [8, 1], strides = [1, 1]} : vector<8x5xf32> to vector<8x1xf32>
    %12 = vector.extract_strided_slice %10 {offsets = [0, 1], sizes = [8, 4], strides = [1, 1]} : vector<8x5xf32> to vector<8x4xf32>
    %c0_1 = arith.constant 0 : index
    %c0_2 = arith.constant 0 : index
    %13 = vector.load %arg2[%c0_1, %c0_2] : memref<1x16xf32, #tpu.memory_space<vmem>>, vector<1x16xf32>
    %14 = vector.broadcast %11 : vector<8x1xf32> to vector<8x16xf32>
    %15 = vector.broadcast %13 : vector<1x16xf32> to vector<8x16xf32>
    %16 = arith.mulf %14, %15 : vector<8x16xf32>
    %c0_3 = arith.constant 0 : index
    %c0_4 = arith.constant 0 : index
    %17 = vector.load %arg3[%c0_3, %c0_4] : memref<1x16xf32, #tpu.memory_space<vmem>>, vector<1x16xf32>
    %18 = vector.broadcast %17 : vector<1x16xf32> to vector<8x16xf32>
    %19 = arith.addf %16, %18 : vector<8x16xf32>
    %cst_5 = arith.constant 0.000000e+00 : f32
    %20 = vector.broadcast %cst_5 : f32 to vector<8x16xf32>
    %21 = arith.maximumf %19, %20 : vector<8x16xf32>
    %c0_6 = arith.constant 0 : index
    %c0_7 = arith.constant 0 : index
    %22 = vector.load %arg4[%c0_6, %c0_7] : memref<16x16xf32, #tpu.memory_space<vmem>>, vector<16x16xf32>
    %cst_8 = arith.constant dense<0.000000e+00> : vector<8x16xf32>
    %23 = tpu.matmul %21, %22, %cst_8 {dimension_numbers = #tpu.dot_dimension_numbers<[1], [0], [0], [1], [0, 0, 1, 1], [], []>} : vector<8x16xf32>, vector<16x16xf32>, vector<8x16xf32> -> vector<8x16xf32>
    %c0_9 = arith.constant 0 : index
    %c0_10 = arith.constant 0 : index
    %24 = vector.load %arg5[%c0_9, %c0_10] : memref<1x16xf32, #tpu.memory_space<vmem>>, vector<1x16xf32>
    %25 = vector.broadcast %24 : vector<1x16xf32> to vector<8x16xf32>
    %26 = arith.addf %23, %25 : vector<8x16xf32>
    %27 = arith.addf %26, %21 : vector<8x16xf32>
    %cst_11 = arith.constant 0.000000e+00 : f32
    %28 = vector.broadcast %cst_11 : f32 to vector<8x16xf32>
    %29 = arith.maximumf %27, %28 : vector<8x16xf32>
    %cst_12 = arith.constant -1.000000e+06 : f32
    %cst_13 = arith.constant 1.000000e+06 : f32
    %30 = vector.broadcast %cst_12 : f32 to vector<8x4xf32>
    %31 = arith.maximumf %30, %12 : vector<8x4xf32>
    %32 = vector.broadcast %cst_13 : f32 to vector<8x4xf32>
    %33 = arith.minimumf %32, %31 : vector<8x4xf32>
    %cst_14 = arith.constant 0.000000e+00 : f32
    %34 = vector.broadcast %cst_14 : f32 to vector<8x4xf32>
    %35 = arith.cmpf one, %12, %34 : vector<8x4xf32>
    %cst_15 = arith.constant 1.000000e+00 : f32
    %cst_16 = arith.constant 0.000000e+00 : f32
    %36 = vector.broadcast %cst_15 : f32 to vector<8x4xf32>
    %37 = vector.broadcast %cst_16 : f32 to vector<8x4xf32>
    %38 = arith.select %35, %36, %37 : vector<8x4xi1>, vector<8x4xf32>
    %c0_17 = arith.constant 0 : index
    %c0_18 = arith.constant 0 : index
    %39 = vector.load %arg6[%c0_17, %c0_18] : memref<4x64xf32, #tpu.memory_space<vmem>>, vector<4x64xf32>
    %cst_19 = arith.constant dense<0.000000e+00> : vector<8x64xf32>
    %40 = tpu.matmul %33, %39, %cst_19 {dimension_numbers = #tpu.dot_dimension_numbers<[1], [0], [0], [1], [0, 0, 1, 1], [], []>} : vector<8x4xf32>, vector<4x64xf32>, vector<8x64xf32> -> vector<8x64xf32>
    %c0_20 = arith.constant 0 : index
    %c0_21 = arith.constant 0 : index
    %41 = vector.load %arg7[%c0_20, %c0_21] : memref<4x64xf32, #tpu.memory_space<vmem>>, vector<4x64xf32>
    %cst_22 = arith.constant dense<0.000000e+00> : vector<8x64xf32>
    %42 = tpu.matmul %38, %41, %cst_22 {dimension_numbers = #tpu.dot_dimension_numbers<[1], [0], [0], [1], [0, 0, 1, 1], [], []>} : vector<8x4xf32>, vector<4x64xf32>, vector<8x64xf32> -> vector<8x64xf32>
    %43 = arith.addf %40, %42 : vector<8x64xf32>
    %c0_23 = arith.constant 0 : index
    %c0_24 = arith.constant 0 : index
    %44 = vector.load %arg8[%c0_23, %c0_24] : memref<1x64xf32, #tpu.memory_space<vmem>>, vector<1x64xf32>
    %45 = vector.broadcast %44 : vector<1x64xf32> to vector<8x64xf32>
    %46 = arith.addf %43, %45 : vector<8x64xf32>
    %cst_25 = arith.constant 0.000000e+00 : f32
    %47 = vector.broadcast %cst_25 : f32 to vector<8x64xf32>
    %48 = arith.maximumf %46, %47 : vector<8x64xf32>
    %c0_26 = arith.constant 0 : index
    %c0_27 = arith.constant 0 : index
    %49 = vector.load %arg9[%c0_26, %c0_27] : memref<64x64xf32, #tpu.memory_space<vmem>>, vector<64x64xf32>
    %cst_28 = arith.constant dense<0.000000e+00> : vector<8x64xf32>
    %50 = tpu.matmul %48, %49, %cst_28 {dimension_numbers = #tpu.dot_dimension_numbers<[1], [0], [0], [1], [0, 0, 1, 1], [], []>} : vector<8x64xf32>, vector<64x64xf32>, vector<8x64xf32> -> vector<8x64xf32>
    %c0_29 = arith.constant 0 : index
    %c0_30 = arith.constant 0 : index
    %51 = vector.load %arg10[%c0_29, %c0_30] : memref<1x64xf32, #tpu.memory_space<vmem>>, vector<1x64xf32>
    %52 = vector.broadcast %51 : vector<1x64xf32> to vector<8x64xf32>
    %53 = arith.addf %50, %52 : vector<8x64xf32>
    %54 = arith.addf %53, %48 : vector<8x64xf32>
    %cst_31 = arith.constant 0.000000e+00 : f32
    %55 = vector.broadcast %cst_31 : f32 to vector<8x64xf32>
    %56 = arith.maximumf %54, %55 : vector<8x64xf32>
    %c0_32 = arith.constant 0 : index
    %c0_33 = arith.constant 0 : index
    %57 = vector.load %arg11[%c0_32, %c0_33] : memref<16x64xf32, #tpu.memory_space<vmem>>, vector<16x64xf32>
    %cst_34 = arith.constant dense<0.000000e+00> : vector<8x64xf32>
    %58 = tpu.matmul %29, %57, %cst_34 {dimension_numbers = #tpu.dot_dimension_numbers<[1], [0], [0], [1], [0, 0, 1, 1], [], []>} : vector<8x16xf32>, vector<16x64xf32>, vector<8x64xf32> -> vector<8x64xf32>
    %c0_35 = arith.constant 0 : index
    %c0_36 = arith.constant 0 : index
    %59 = vector.load %arg12[%c0_35, %c0_36] : memref<64x64xf32, #tpu.memory_space<vmem>>, vector<64x64xf32>
    %cst_37 = arith.constant dense<0.000000e+00> : vector<8x64xf32>
    %60 = tpu.matmul %56, %59, %cst_37 {dimension_numbers = #tpu.dot_dimension_numbers<[1], [0], [0], [1], [0, 0, 1, 1], [], []>} : vector<8x64xf32>, vector<64x64xf32>, vector<8x64xf32> -> vector<8x64xf32>
    %61 = arith.addf %58, %60 : vector<8x64xf32>
    %c0_38 = arith.constant 0 : index
    %c0_39 = arith.constant 0 : index
    %62 = vector.load %arg13[%c0_38, %c0_39] : memref<1x64xf32, #tpu.memory_space<vmem>>, vector<1x64xf32>
    %63 = vector.broadcast %62 : vector<1x64xf32> to vector<8x64xf32>
    %64 = arith.addf %61, %63 : vector<8x64xf32>
    %cst_40 = arith.constant 0.000000e+00 : f32
    %65 = vector.broadcast %cst_40 : f32 to vector<8x64xf32>
    %66 = arith.maximumf %64, %65 : vector<8x64xf32>
    %c0_41 = arith.constant 0 : index
    %c0_42 = arith.constant 0 : index
    %67 = vector.load %arg14[%c0_41, %c0_42] : memref<64x64xf32, #tpu.memory_space<vmem>>, vector<64x64xf32>
    %cst_43 = arith.constant dense<0.000000e+00> : vector<8x64xf32>
    %68 = tpu.matmul %66, %67, %cst_43 {dimension_numbers = #tpu.dot_dimension_numbers<[1], [0], [0], [1], [0, 0, 1, 1], [], []>} : vector<8x64xf32>, vector<64x64xf32>, vector<8x64xf32> -> vector<8x64xf32>
    %c0_44 = arith.constant 0 : index
    %c0_45 = arith.constant 0 : index
    %69 = vector.load %arg15[%c0_44, %c0_45] : memref<1x64xf32, #tpu.memory_space<vmem>>, vector<1x64xf32>
    %70 = vector.broadcast %69 : vector<1x64xf32> to vector<8x64xf32>
    %71 = arith.addf %68, %70 : vector<8x64xf32>
    %72 = arith.addf %71, %66 : vector<8x64xf32>
    %cst_46 = arith.constant 0.000000e+00 : f32
    %73 = vector.broadcast %cst_46 : f32 to vector<8x64xf32>
    %74 = arith.maximumf %72, %73 : vector<8x64xf32>
    %c0_47 = arith.constant 0 : index
    %c0_48 = arith.constant 0 : index
    %75 = vector.load %arg16[%c0_47, %c0_48] : memref<64x64xf32, #tpu.memory_space<vmem>>, vector<64x64xf32>
    %cst_49 = arith.constant dense<0.000000e+00> : vector<8x64xf32>
    %76 = tpu.matmul %74, %75, %cst_49 {dimension_numbers = #tpu.dot_dimension_numbers<[1], [0], [0], [1], [0, 0, 1, 1], [], []>} : vector<8x64xf32>, vector<64x64xf32>, vector<8x64xf32> -> vector<8x64xf32>
    %c0_50 = arith.constant 0 : index
    %c0_51 = arith.constant 0 : index
    %77 = vector.load %arg17[%c0_50, %c0_51] : memref<1x64xf32, #tpu.memory_space<vmem>>, vector<1x64xf32>
    %78 = vector.broadcast %77 : vector<1x64xf32> to vector<8x64xf32>
    %79 = arith.addf %76, %78 : vector<8x64xf32>
    %80 = arith.addf %79, %74 : vector<8x64xf32>
    %cst_52 = arith.constant 0.000000e+00 : f32
    %81 = vector.broadcast %cst_52 : f32 to vector<8x64xf32>
    %82 = arith.maximumf %80, %81 : vector<8x64xf32>
    %c0_53 = arith.constant 0 : index
    %c0_54 = arith.constant 0 : index
    %83 = vector.load %arg18[%c0_53, %c0_54] : memref<64x6xf32, #tpu.memory_space<vmem>>, vector<64x6xf32>
    %cst_55 = arith.constant dense<0.000000e+00> : vector<8x6xf32>
    %84 = tpu.matmul %82, %83, %cst_55 {dimension_numbers = #tpu.dot_dimension_numbers<[1], [0], [0], [1], [0, 0, 1, 1], [], []>} : vector<8x64xf32>, vector<64x6xf32>, vector<8x6xf32> -> vector<8x6xf32>
    %c0_56 = arith.constant 0 : index
    %c0_57 = arith.constant 0 : index
    %85 = vector.load %arg19[%c0_56, %c0_57] : memref<8x6xf32, #tpu.memory_space<vmem>>, vector<8x6xf32>
    tpu.vector_store %arg19[%c0_56, %c0_57], %84 {strides = array<i32>} : memref<8x6xf32, #tpu.memory_space<vmem>>, vector<8x6xf32>,
    %cst_58 = arith.constant 0.000000e+00 : f32
    %86 = vector.shape_cast %5 : vector<8x1xi1> to vector<8x1xi1>
    %87 = vector.broadcast %86 : vector<8x1xi1> to vector<8x64xi1>
    %88 = vector.broadcast %cst_58 : f32 to vector<8x64xf32>
    %89 = arith.select %87, %82, %88 : vector<8x64xi1>, vector<8x64xf32>
    %cst_59 = arith.constant dense<0.000000e+00> : vector<64xf32>
    %90 = vector.multi_reduction <add>, %89, %cst_59 [0] : vector<8x64xf32> to vector<64xf32>
    %91 = vector.shape_cast %90 : vector<64xf32> to vector<1x64xf32>
    %92 = arith.mulf %89, %89 : vector<8x64xf32>
    %cst_60 = arith.constant dense<0.000000e+00> : vector<64xf32>
    %93 = vector.multi_reduction <add>, %92, %cst_60 [0] : vector<8x64xf32> to vector<64xf32>
    %94 = vector.shape_cast %93 : vector<64xf32> to vector<1x64xf32>
    %95 = tpu.iota {dimensions = array<i32: 0>} : vector<2x64xi32>
    %c0_i32 = arith.constant 0 : i32
    %96 = vector.broadcast %c0_i32 : i32 to vector<2x64xi32>
    %97 = arith.cmpi eq, %95, %96 : vector<2x64xi32>
    %98 = vector.shape_cast %91 : vector<1x64xf32> to vector<1x64xf32>
    %99 = vector.broadcast %98 : vector<1x64xf32> to vector<2x64xf32>
    %100 = vector.shape_cast %94 : vector<1x64xf32> to vector<1x64xf32>
    %101 = vector.broadcast %100 : vector<1x64xf32> to vector<2x64xf32>
    %102 = arith.select %97, %99, %101 : vector<2x64xi1>, vector<2x64xf32>
    %c0_61 = arith.constant 0 : index
    %c0_62 = arith.constant 0 : index
    %c0_63 = arith.constant 0 : index
    %103 = vector.load %arg20[%c0_61, %c0_62, %c0_63] : memref<1x2x64xf32, #tpu.memory_space<vmem>>, vector<1x2x64xf32>
    %104 = vector.shape_cast %103 : vector<1x2x64xf32> to vector<2x64xf32>
    %105 = vector.shape_cast %102 : vector<2x64xf32> to vector<1x2x64xf32>
    tpu.vector_store %arg20[%c0_61, %c0_62, %c0_63], %105 {strides = array<i32>} : memref<1x2x64xf32, #tpu.memory_space<vmem>>, vector<1x2x64xf32>,
    return
  }
  func.func @transform_0(%arg0: i32) -> (i32, i32) {
    %c0_i32 = arith.constant 0 : i32
    %c0_i32_0 = arith.constant 0 : i32
    return %arg0, %c0_i32 : i32, i32
  }
  func.func @transform_1(%arg0: i32) -> (i32, i32) {
    %c0_i32 = arith.constant 0 : i32
    %c0_i32_0 = arith.constant 0 : i32
    %c0_i32_1 = arith.constant 0 : i32
    return %c0_i32, %c0_i32_0 : i32, i32
  }
  func.func @transform_2(%arg0: i32) -> (i32, i32) {
    %c0_i32 = arith.constant 0 : i32
    %c0_i32_0 = arith.constant 0 : i32
    %c0_i32_1 = arith.constant 0 : i32
    return %c0_i32, %c0_i32_0 : i32, i32
  }
  func.func @transform_3(%arg0: i32) -> (i32, i32) {
    %c0_i32 = arith.constant 0 : i32
    %c0_i32_0 = arith.constant 0 : i32
    %c0_i32_1 = arith.constant 0 : i32
    return %c0_i32, %c0_i32_0 : i32, i32
  }
  func.func @transform_4(%arg0: i32) -> (i32, i32) {
    %c0_i32 = arith.constant 0 : i32
    %c0_i32_0 = arith.constant 0 : i32
    %c0_i32_1 = arith.constant 0 : i32
    return %c0_i32, %c0_i32_0 : i32, i32
  }
  func.func @transform_5(%arg0: i32) -> (i32, i32) {
    %c0_i32 = arith.constant 0 : i32
    %c0_i32_0 = arith.constant 0 : i32
    %c0_i32_1 = arith.constant 0 : i32
    return %c0_i32, %c0_i32_0 : i32, i32
  }
  func.func @transform_6(%arg0: i32) -> (i32, i32) {
    %c0_i32 = arith.constant 0 : i32
    %c0_i32_0 = arith.constant 0 : i32
    %c0_i32_1 = arith.constant 0 : i32
    return %c0_i32, %c0_i32_0 : i32, i32
  }
  func.func @transform_7(%arg0: i32) -> (i32, i32) {
    %c0_i32 = arith.constant 0 : i32
    %c0_i32_0 = arith.constant 0 : i32
    %c0_i32_1 = arith.constant 0 : i32
    return %c0_i32, %c0_i32_0 : i32, i32
  }
  func.func @transform_8(%arg0: i32) -> (i32, i32) {
    %c0_i32 = arith.constant 0 : i32
    %c0_i32_0 = arith.constant 0 : i32
    %c0_i32_1 = arith.constant 0 : i32
    return %c0_i32, %c0_i32_0 : i32, i32
  }
  func.func @transform_9(%arg0: i32) -> (i32, i32) {
    %c0_i32 = arith.constant 0 : i32
    %c0_i32_0 = arith.constant 0 : i32
    %c0_i32_1 = arith.constant 0 : i32
    return %c0_i32, %c0_i32_0 : i32, i32
  }
  func.func @transform_10(%arg0: i32) -> (i32, i32) {
    %c0_i32 = arith.constant 0 : i32
    %c0_i32_0 = arith.constant 0 : i32
    %c0_i32_1 = arith.constant 0 : i32
    return %c0_i32, %c0_i32_0 : i32, i32
  }
  func.func @transform_11(%arg0: i32) -> (i32, i32) {
    %c0_i32 = arith.constant 0 : i32
    %c0_i32_0 = arith.constant 0 : i32
    %c0_i32_1 = arith.constant 0 : i32
    return %c0_i32, %c0_i32_0 : i32, i32
  }
  func.func @transform_12(%arg0: i32) -> (i32, i32) {
    %c0_i32 = arith.constant 0 : i32
    %c0_i32_0 = arith.constant 0 : i32
    %c0_i32_1 = arith.constant 0 : i32
    return %c0_i32, %c0_i32_0 : i32, i32
  }
  func.func @transform_13(%arg0: i32) -> (i32, i32) {
    %c0_i32 = arith.constant 0 : i32
    %c0_i32_0 = arith.constant 0 : i32
    %c0_i32_1 = arith.constant 0 : i32
    return %c0_i32, %c0_i32_0 : i32, i32
  }
  func.func @transform_14(%arg0: i32) -> (i32, i32) {
    %c0_i32 = arith.constant 0 : i32
    %c0_i32_0 = arith.constant 0 : i32
    %c0_i32_1 = arith.constant 0 : i32
    return %c0_i32, %c0_i32_0 : i32, i32
  }
  func.func @transform_15(%arg0: i32) -> (i32, i32) {
    %c0_i32 = arith.constant 0 : i32
    %c0_i32_0 = arith.constant 0 : i32
    %c0_i32_1 = arith.constant 0 : i32
    return %c0_i32, %c0_i32_0 : i32, i32
  }
  func.func @transform_16(%arg0: i32) -> (i32, i32) {
    %c0_i32 = arith.constant 0 : i32
    %c0_i32_0 = arith.constant 0 : i32
    %c0_i32_1 = arith.constant 0 : i32
    return %c0_i32, %c0_i32_0 : i32, i32
  }
  func.func @transform_17(%arg0: i32) -> (i32, i32) {
    %c0_i32 = arith.constant 0 : i32
    %c0_i32_0 = arith.constant 0 : i32
    %c0_i32_1 = arith.constant 0 : i32
    return %c0_i32, %c0_i32_0 : i32, i32
  }
  func.func @transform_18(%arg0: i32) -> (i32, i32) {
    %c0_i32 = arith.constant 0 : i32
    %c0_i32_0 = arith.constant 0 : i32
    return %arg0, %c0_i32 : i32, i32
  }
  func.func @transform_19(%arg0: i32) -> (i32, i32, i32) {
    %c0_i32 = arith.constant 0 : i32
    %c0_i32_0 = arith.constant 0 : i32
    %c0_i32_1 = arith.constant 0 : i32
    return %arg0, %c0_i32, %c0_i32_0 : i32, i32, i32
  }
}

</mosaic_0001>

<bundles_post_ra>
// kernel: tpu_custom_call.1
= control target key start
LH: loop header
LB: loop body
LE: loop exit
PB: predicated region body
PF: predicated region fallthrough
CT: control target
= control target key end

     0   :  { %s2159_s0 = inlined_call_operand.vmem [shape: f32[20,5], index: 0, kind: input, shape index: {}]   ;;  %s2160_s1 = inlined_call_operand.hbm [shape: f32[1,16], index: 1, kind: input, shape index: {}]   ;;  %s2161_s2 = inlined_call_operand.hbm [shape: f32[1,16], index: 2, kind: input, shape index: {}]   ;;  %s2162_s3 = inlined_call_operand.vmem [shape: f32[16,16], index: 3, kind: input, shape index: {}]   ;;  %s2163_s4 = inlined_call_operand.hbm [shape: f32[1,16], index: 4, kind: input, shape index: {}]   ;;  %s2164_s5 = inlined_call_operand.vmem [shape: f32[4,64], index: 5, kind: input, shape index: {}]   ;;  %s2165_s6 = inlined_call_operand.vmem [shape: f32[4,64], index: 6, kind: input, shape index: {}]   ;;  %s2166_s7 = inlined_call_operand.hbm [shape: f32[1,64], index: 7, kind: input, shape index: {}]   ;;  %s2167_s8 = inlined_call_operand.vmem [shape: f32[64,64], index: 8, kind: input, shape index: {}]   ;;  %s2168_s9 = inlined_call_operand.hbm [shape: f32[1,64], index: 9, kind: input, shape index: {}]   ;;  %s2169_s10 = inlined_call_operand.vmem [shape: f32[16,64], index: 10, kind: input, shape index: {}]   ;;  %s2170_s11 = inlined_call_operand.hbm [shape: f32[64,64], index: 11, kind: input, shape index: {}]   ;;  %s2171_s12 = inlined_call_operand.vmem [shape: f32[1,64], index: 12, kind: input, shape index: {}]   ;;  %s2172_s13 = inlined_call_operand.hbm [shape: f32[64,64], index: 13, kind: input, shape index: {}]   ;;  %s2173_s14 = inlined_call_operand.vmem [shape: f32[1,64], index: 14, kind: input, shape index: {}]   ;;  %s2174_s15 = inlined_call_operand.hbm [shape: f32[64,64], index: 15, kind: input, shape index: {}]   ;;  %s2175_s16 = inlined_call_operand.vmem [shape: f32[1,64], index: 16, kind: input, shape index: {}]   ;;  %s2176_s17 = inlined_call_operand.vmem [shape: f32[64,6], index: 17, kind: input, shape index: {}]   ;;  %s2177_s18 = inlined_call_operand.vmem [shape: f32[20,6], index: 18, kind: output, shape index: {0}]   ;;  %s2178_s19 = inlined_call_operand.hbm [shape: f32[3,2,64], index: 19, kind: output, shape index: {1}]  }
   0x1   :  { %2189 = sst [smem:[#allocation30_spill]] %s2159_s0 }
   0x2   :  { %2190 = sst [smem:[#allocation31_spill]] %s2160_s1 }
   0x3   :  { %2191 = sst [smem:[#allocation32_spill]] %s2161_s2 }
   0x4   :  { %2192 = sst [smem:[#allocation33_spill]] %s2162_s3 }
   0x5   :  { %2193 = sst [smem:[#allocation34_spill]] %s2163_s4 }
   0x6   :  { %2194 = sst [smem:[#allocation35_spill]] %s2166_s7 }
   0x7   :  { %2195 = sst [smem:[#allocation36_spill]] %s2175_s16 }
   0x8   :  { %2196 = sst [smem:[#allocation37_spill]] %s2177_s18 }
   0x9   :  { %2197 = sst [smem:[#allocation38_spill]] %s2178_s19 }
   0xa   :  { %25 = vsyncpa [#allocation3], 0 }
   0xb   :  { %26 = vsyncpa [#allocation6], 0 }
   0xc   :  { %27 = vsyncpa [#allocation9], 0 }
   0xd   :  { %28 = vsyncpa [#allocation12], 0 }
   0xe   :  { %29 = vsyncpa [#allocation15], 0 }
   0xf   :  { %30 = vsyncpa [#allocation4], 0 }
  0x10   :  { %32 = vsyncpa [#allocation4 + $0x1], 0  ;;  %s1884_s0 = smov 0   ;;  %s1886_s30 = smov 0  }
  0x11   :  { %s1888_s20 = smov 0   ;;  %s1890_s21 = smov 0  }
  0x12 LB: > { %2198 = sst [smem:[#allocation23_spill]] %s1757_s0  ;;  %s1905_s1 = sadd.s32 4294967295, %s1769_s21   ;;  %s1769_s21 = sphi %s1890_s21, %s2222_s21   ;;  %s1765_s20 = sphi %s1888_s20, %s2224_s20   ;;  %s1761_s30 = sphi %s1886_s30, %s2226_s30   ;;  %s1757_s0 = sphi %s1884_s0, %s2225_s0  }
  0x13   : > { %2199 = sst [smem:[#allocation24_spill]] %s1765_s20  ;;  %s1272_s22 = sadd.s32 4294967294, %s1769_s21  }
  0x14   : > { %2200 = sst [smem:[#allocation25_spill]] %s1769_s21  ;;  %s1909_s2 = sadd.s32 1, %s1769_s21  }
  0x15   : > { %2201 = sst [smem:[#allocation26_spill]] %s1909_s2  ;;  %s454_s23 = sadd.s32 1, %s1765_s20 }
  0x16   : > { %s451_s24 = ssub.s32 %s1769_s21, %s1909_s2  ;;  %p464_p0 = scmp.ne.s32.totalorder %s1765_s20, %s1761_s30 }
  0x17   : > { %p452_p1 = scmp.eq.s32.totalorder %s451_s24, 0  ;;  %p465_p2 = scmp.eq.s32.totalorder %s1905_s1, 2 }
  0x18   : > { %p470_p3 = scmp.ne.s32.totalorder %s1761_s30, %s1757_s0  ;;  %p471_p4 = scmp.eq.s32.totalorder %s1272_s22, 2 }
  0x19   : > { %s1920_s25 = scalar_select %p452_p1, %s1765_s20, %s454_s23  }
  0x1a   : > { %p1922_p5 = por %p465_p2, %p464_p0  ;;  %p1926_p6 = por %p471_p4, %p470_p3 }
  0x1b   : > { %2202 = sst [smem:[#allocation27_spill]] %s1920_s25  ;;  %p1273_p7 = scmp.ge.s32.totalorder %s1769_s21, 1 }
  0x1c   : > { %s2203_s3 = scalar_select %p1922_p5, 1, 0 }
  0x1d   : > { %s2205_s26 = scalar_select %p1926_p6, 1, 0 }
  0x1e   : > { %2204 = sst [smem:[#allocation28_spill]] %s2203_s3  ;;  %p478_p8 = scmp.lt.s32.totalorder %s1769_s21, 4 }
  0x1f   : > { %2206 = sst [smem:[#allocation29_spill]] %s2205_s26  ;;  %p1375_p9 = scmp.eq.s32.totalorder %s1905_s1, 0 }
  0x20   : > { %p1933_p10 = pnand %p1273_p7, %p478_p8  ;;  %s2208_s22 = sld [smem:[#allocation32_spill]] }
  0x21   : > { %s1771_s24 = smov [#allocation5]   ;;  %s2209_s7 = sld [smem:[#allocation35_spill]] }
  0x22   : > { %p1346_p11 = pneg %p1933_p10  ;;  %s504_s25 = sshll.u32 %s1771_s24, 4  ;;  %s505_s25 = int_to_ptr.vmem [resolvable:$true] %s504_s25 }
  0x23   : > { %s1772_s21 = smov [#allocation8]   ;;  %s1773_s20 = smov [#allocation11]  }
  0x24   : > { %p1947_p12 = pnand %p1375_p9, %p1346_p11  ;;  %s537_s24 = sshll.u32 %s1772_s21, 4  ;;  %s538_s24 = int_to_ptr.vmem [resolvable:$true] %s537_s24 }
  0x25   : > { %s566_s2 = sshll.u32 %s1773_s20, 4  ;;  %s2211_s3 = sld [smem:[#allocation31_spill]]  ;;  %s567_s2 = int_to_ptr.vmem [resolvable:$true] %s566_s2 }
  0x26   : > { %s502_s23 = sshll.u32 %s2208_s22, 4  ;;  %s564_s22 = sshll.u32 %s2170_s11, 4  ;;  %s503_s23 = int_to_ptr.hbm [resolvable:$true] %s502_s23  ;;  %s565_s22 = int_to_ptr.hbm [resolvable:$true] %s564_s22 }
  0x27   : > { %s535_s26 = sshll.u32 %s2209_s7, 4  ;;  %s1774_s16 = smov 128   ;;  %s536_s26 = int_to_ptr.hbm [resolvable:$true] %s535_s26 }
  0x28   : > { %1352 = dma.hbm_to_vmem [thread:$0]  (!%p1947_p12), %s503_s23, 16, %s505_s25, [#allocation6]  }
  0x29   : > { %1358 = dma.hbm_to_vmem [thread:$0]  (!%p1947_p12), %s536_s26, 16, %s538_s24, [#allocation9]  }
  0x2a   : > { %s1775_s28 = smov 8   ;;  %s1776_s21 = smov [#allocation2]  }
  0x2b   : > { %s490_s19 = sshll.u32 %s2211_s3, 4  ;;  %s492_s25 = sshll.u32 %s1776_s21, 4  ;;  %s491_s19 = int_to_ptr.hbm [resolvable:$true] %s490_s19  ;;  %s493_s25 = int_to_ptr.vmem [resolvable:$true] %s492_s25 }
  0x2c   : > { %1364 = dma.hbm_to_vmem [thread:$0]  (!%p1947_p12), %s565_s22, 1024, %s567_s2, [#allocation12], %s1774_s16, %s1774_s16, %s1775_s28  }
  0x2d   : > { %s2212_s4 = sld [smem:[#allocation34_spill]]  ;;  %s550_s3 = sshll.u32 %s2168_s9, 4  ;;  %s551_s3 = int_to_ptr.hbm [resolvable:$true] %s550_s3 }
  0x2e   : > { %1349 = dma.hbm_to_vmem [thread:$0]  (!%p1947_p12), %s491_s19, 16, %s493_s25, [#allocation3]  }
  0x2f   : > { %s1777_s24 = smov [#allocation7]   ;;  %s1778_s22 = smov [#allocation10]  }
  0x30   : > { %s519_s20 = sshll.u32 %s1777_s24, 4  ;;  %s552_s2 = sshll.u32 %s1778_s22, 4  ;;  %s520_s20 = int_to_ptr.vmem [resolvable:$true] %s519_s20  ;;  %s553_s2 = int_to_ptr.vmem [resolvable:$true] %s552_s2 }
  0x31   : > { %s581_s26 = sshll.u32 %s2172_s13, 4  ;;  %s598_s7 = sshll.u32 %s2174_s15, 4  ;;  %s582_s26 = int_to_ptr.hbm [resolvable:$true] %s581_s26  ;;  %s599_s7 = int_to_ptr.hbm [resolvable:$true] %s598_s7 }
  0x32   : > { %1361 = dma.hbm_to_vmem [thread:$0]  (!%p1947_p12), %s551_s3, 16, %s553_s2, [#allocation9]  }
  0x33   : > { %s517_s29 = sshll.u32 %s2212_s4, 4  ;;  %s1779_s18 = smov [#allocation13]   ;;  %s518_s29 = int_to_ptr.hbm [resolvable:$true] %s517_s29 }
  0x34   : > { %1355 = dma.hbm_to_vmem [thread:$0]  (!%p1947_p12), %s518_s29, 16, %s520_s20, [#allocation6]  }
  0x35   : > { %s583_s24 = sshll.u32 %s1779_s18, 4  ;;  %s1780_s29 = smov [#allocation14]   ;;  %s584_s24 = int_to_ptr.vmem [resolvable:$true] %s583_s24 }
  0x36   : > { %1367 = dma.hbm_to_vmem [thread:$0]  (!%p1947_p12), %s582_s26, 1024, %s584_s24, [#allocation12], %s1774_s16, %s1774_s16, %s1775_s28  }
  0x37   : > { %s600_s20 = sshll.u32 %s1780_s29, 4  ;;  %629 = sbr.rel (%p1933_p10) target bundleno = 1009 (0x3f1), region = 92  ;;  %s601_s20 = int_to_ptr.vmem [resolvable:$true] %s600_s20 }
  0x38   : > { %1370 = dma.hbm_to_vmem [thread:$0]  (!%p1947_p12), %s599_s7, 1024, %s601_s20, [#allocation15], %s1774_s16, %s1774_s16, %s1775_s28  }
  0x3c   : > { %1732 = dma.done.wait (%p1375_p9), [#allocation3], 16  }
  0x3d   : > { %1734 = vsyncadd (%p1375_p9), [#allocation3], 4294967280 }
  0x3e   : > { %1736 = dma.done.wait (%p1375_p9), [#allocation6], 32  }
  0x3f   : > { %1738 = vsyncadd (%p1375_p9), [#allocation6], 4294967264 }
  0x40   : > { %1740 = dma.done.wait (%p1375_p9), [#allocation9], 32  }
  0x41   : > { %1742 = vsyncadd (%p1375_p9), [#allocation9], 4294967264 }
  0x42   : > { %1744 = dma.done.wait (%p1375_p9), [#allocation12], 2048  }
  0x43   : > { %1746 = vsyncadd (%p1375_p9), [#allocation12], 4294965248 }
  0x44   : > { %1748 = dma.done.wait (%p1375_p9), [#allocation15], 1024  }
  0x45   : > { %1750 = vsyncadd (%p1375_p9), [#allocation15], 4294966272  ;;  %p724_p13 = scmp.lt.s32.totalorder %s1905_s1, 2  ;;  %s1295_s16 = sshll.u32 %s1905_s1, 3  ;;  %v733_v0 = vlaneseq  ;;  %v1781_v2 = vmov 0   ;;  %vm802_vm0 = vcmask 1043456  }
  0x46   : > { %v735_v1 = vstv %s1295_s16  ;;  %1437 = vset.pattern.permute.xlu1 %v1781_v2  ;;  %1438 = vset.pattern.permute.xlu0 %v1781_v2  ;;  %s2213_s22 = sld [smem:[#allocation30_spill]]  ;;  %v794_v6 = vld [vmem:[%s2164_s5] sm:$0xf]  ;;  %s1782_s26 = smov 127   ;;  %v1783_v9 = vmov 0.0   ;;  %v867_v14 = vld [vmem:[%s2167_s8 + $0x38] sm:$0xff] }
  0x47   : > { %s2019_s0 = scalar_select %p724_p13, %s1905_s1, 2  ;;  %v2021_v3 = vshrl.u32 %v733_v0, 7  ;;  %1300 = vmatpush.msk.msra.mxu2 %vm802_vm0, %v794_v6  ;;  %v795_v11 = vld [vmem:[%s2165_s6] sm:$0xf]  ;;  %884 = vmatpush.msra.mxu3 %v867_v14  ;;  %v866_v15 = vld [vmem:[%s2167_s8 + $0x30] sm:$0xff]  ;;  %v865_v16 = vld [vmem:[%s2167_s8 + $0x28] sm:$0xff] }
  0x48   : > { %1298 = vmatpush.msk.msra.mxu1 %vm802_vm0, %v795_v11  ;;  %s2214_s24 = sld [smem:[#allocation33_spill]]  ;;  %v1439_v17 = vld [vmem:[#allocation2] ss:$0 sm:$0xff]  ;;  %v1440_v18 = vld [vmem:[#allocation5] ss:$0 sm:$0xff]  ;;  %vm799_vm3 = vcmask 31744  }
  0x49   : > { %s1293_s27 = sshll.u32 %s2019_s0, 3  ;;  %v2025_v4 = vadd.s32 %v735_v1, %v2021_v3  ;;  %885 = vmatpush.msra.mxu3 %v866_v15  ;;  %vm764_vm4 = vcmask 130048   ;;  %v864_v25 = vld [vmem:[%s2167_s8 + $0x20] sm:$0xff]  ;;  %v863_v26 = vld [vmem:[%s2167_s8 + $0x18] sm:$0xff]  ;;  %v862_v27 = vld [vmem:[%s2167_s8 + $0x10] sm:$0xff]  ;;  %vm872_vm5 = vcmask 523264  }
  0x4a   : > { %v861_v28 = vld [vmem:[%s2167_s8 + $0x8] sm:$0xff]  ;;  %v860_v29 = vld [vmem:[%s2167_s8] sm:$0xff]  ;;  %v905_v34 = vld [vmem:[#allocation11 + $0x28] sm:$0xff]  ;;  %s2215_s16 = sld [smem:[#allocation36_spill]]  ;;  %s721_s28 = sand.u32 1, %s1761_s30   ;;  %vm1083_vm6 = vcmp.eq.s32.totalorder %v2021_v3, 0 }
  0x4b   : > { %vm737_vm1 = vcmp.lt.s32.totalorder %v2025_v4, 20  ;;  %886 = vmatpush.msra.mxu3 %v865_v16  ;;  %v899_v30 = vld [vmem:[%s2169_s10 + $0x8] sm:$0xff]  ;;  %v898_v31 = vld [vmem:[%s2169_s10] sm:$0xff]  ;;  %v901_v49 = vld [vmem:[#allocation11 + $0x8] sm:$0xff]  ;;  %s1309_s3 = sshll.u32 %s1905_s1, 1  ;;  %s2216_s23 = sld [smem:[#allocation38_spill]] }
  0x4c   : > { %s727_s2 = scalar_lea.vmem %s2213_s22, %s1293_s27  ;;  %v907_v32 = vld [vmem:[#allocation11 + $0x38] sm:$0xff]  ;;  %948 = vmatpush.msrb.mxu2 %v899_v30  ;;  %v906_v33 = vld [vmem:[#allocation11 + $0x30] sm:$0xff]  ;;  %v904_v35 = vld [vmem:[#allocation11 + $0x20] sm:$0xff]  ;;  %s1292_s22 = sshll.u32 %s721_s28, 1  ;;  %vm1085_vm7 = vcmask 517120  }
  0x4d   : > { %v738_v5 = vld [vmem:[%s727_s2] sm:$0xff]  ;;  %887 = vmatpush.msra.mxu3 %v864_v25  ;;  %919 = vmatpush.msrb.mxu1 %v907_v32  ;;  %v900_v50 = vld [vmem:[#allocation11] sm:$0xff]  ;;  %v965_v53 = vld [vmem:[#allocation13 + $0x28] sm:$0xff]  ;;  %s723_s19 = scalar_lea.vmem [#allocation16], %s1292_s22  ;;  %s1092_s1 = scalar_lea.sflag [#allocation4], %s721_s28 }
  0x4e   : > { %v741_v7 = vsel %vm737_vm1, %v738_v5, 0.0  ;;  %v759_v12 = vld [vmem:[%s2214_s24 + $0x8] sm:$0xff]  ;;  %v758_v13 = vld [vmem:[%s2214_s24] sm:$0xff]  ;;  %949 = vmatpush.msrb.mxu2 %v898_v31  ;;  %v961_v62 = vld [vmem:[#allocation13 + $0x8] sm:$0xff]  ;;  %s1107_s7 = sshll.u32 %s723_s19, 4  ;;  %s1108_s7 = int_to_ptr.vmem [resolvable:$true] %s1107_s7 }
  0x4f   : > { %v1297_v8 = vclamps-f32 %v741_v7, 1000000.0  ;;  %745 = vperm.xlu1 %1437, %v741_v7   ;;  %vm792_vm2 = vcmp.ne.f32.partialorder %v741_v7, 0.0  ;;  %782 = vmatpush.msra.mxu0 %v759_v12  ;;  %v1442_v36 = vld [vmem:[#allocation7] ss:$0 sm:$0xff]  ;;  %v902_v48 = vld [vmem:[#allocation11 + $0x10] sm:$0xff] }
  0x50   : > { %v793_v10 = vsel %vm792_vm2, 1.0, %v1783_v9  ;;  %888 = vmatpush.msra.mxu3 %v863_v26  ;;  %920 = vmatpush.msrb.mxu1 %v906_v33  ;;  %v1441_v39 = vld [vmem:[#allocation8] ss:$0 sm:$0xff]  ;;  %v966_v52 = vld [vmem:[#allocation13 + $0x30] sm:$0xff]  ;;  %v964_v54 = vld [vmem:[#allocation13 + $0x20] sm:$0xff] }
  0x51   : > { %827 = vrot.lane.b32.xlu0 %v1297_v8, %s1782_s26  ;;  %783 = vmatpush.msra.mxu0 %v758_v13  ;;  %v903_v47 = vld [vmem:[#allocation11 + $0x18] sm:$0xff]  ;;  %v962_v61 = vld [vmem:[#allocation13 + $0x10] sm:$0xff]  ;;  %v960_v63 = vld [vmem:[#allocation13] sm:$0xff]  ;;  %s1707_s22 = scalar_lea.hbm %s2216_s23, 6 }
  0x52   : > { %889 = vmatpush.msra.mxu3 %v862_v27  ;;  %921 = vmatpush.msrb.mxu1 %v905_v34  ;;  %v967_v51 = vld [vmem:[#allocation13 + $0x38] sm:$0xff]  ;;  %v1003_v1 = vld [vmem:[#allocation14 + $0x30] sm:$0xff]  ;;  %v1002_v2 = vld [vmem:[#allocation14 + $0x28] sm:$0xff] }
  0x53   : > { %983 = vmatpush.msrb.mxu0 %v967_v51  ;;  %v1443_v55 = vld [vmem:[#allocation10] ss:$0 sm:$0xff]  ;;  %v1001_v5 = vld [vmem:[#allocation14 + $0x20] sm:$0xff]  ;;  %v1444_v6 = vld [vmem:[%s2171_s12] ss:$0 sm:$0xff] }
  0x54   : > { %890 = vmatpush.msra.mxu3 %v861_v28  ;;  %922 = vmatpush.msrb.mxu1 %v904_v35  ;;  %v963_v60 = vld [vmem:[#allocation13 + $0x18] sm:$0xff]  ;;  %v999_v13 = vld [vmem:[#allocation14 + $0x10] sm:$0xff]  ;;  %v998_v14 = vld [vmem:[#allocation14 + $0x8] sm:$0xff] }
  0x55   : > { %984 = vmatpush.msrb.mxu0 %v966_v52  ;;  %v1004_v0 = vld [vmem:[#allocation14 + $0x38] sm:$0xff]  ;;  %v997_v15 = vld [vmem:[#allocation14] sm:$0xff]  ;;  %v1041_v16 = vld [vmem:[%s2176_s17 + $0x38] sm:$0xff] }
  0x56   : > { %891 = vmatpush.msra.mxu3 %v860_v29  ;;  %923 = vmatpush.msrb.mxu1 %v903_v47  ;;  %v1000_v12 = vld [vmem:[#allocation14 + $0x18] sm:$0xff]  ;;  %v1037_v25 = vld [vmem:[%s2176_s17 + $0x18] sm:$0xff]  ;;  %v1036_v26 = vld [vmem:[%s2176_s17 + $0x10] sm:$0xff] }
  0x57   : > { %985 = vmatpush.msrb.mxu0 %v965_v53  ;;  %v1035_v27 = vld [vmem:[%s2176_s17 + $0x8] sm:$0xff]  ;;  %v1034_v28 = vld [vmem:[%s2176_s17] sm:$0xff] }
  0x58   : > { %924 = vmatpush.msrb.mxu1 %v902_v48  ;;  %1053 = vmatpush.msrb.mxu3 %v1041_v16  ;;  %v1446_v29 = vld [vmem:[%s2215_s16] ss:$0 sm:$0xff] }
  0x59   : > { %797 = vrot.lane.b32.xlu0 %v793_v10, %s1782_s26  ;;  %986 = vmatpush.msrb.mxu0 %v964_v54  ;;  %s1105_s26 = scalar_lea.hbm %s2216_s23, %s1309_s3 }
  0x5a   : > { %925 = vmatpush.msrb.mxu1 %v901_v49  ;;  %s1109_s18 = sshll.u32 %s1105_s26, 4  ;;  %s1110_s18 = int_to_ptr.hbm [resolvable:$true] %s1109_s18 }
  0x5b   : > { %987 = vmatpush.msrb.mxu0 %v963_v60  ;;  %s1701_s29 = sshra.s32 %s1110_s18, 4  ;;  %s1702_s29 = int_to_ptr.hbm [resolvable:$true] %s1701_s29 }
  0x5c   : > { %926 = vmatpush.msrb.mxu1 %v900_v50  ;;  %s1703_s20 = scalar_lea.hbm %s1702_s29, 2  ;;  %p1708_p3 = scmp.lt.s32.totalorder %s1702_s29, %s2216_s23 }
  0x5d   : > { %988 = vmatpush.msrb.mxu0 %v962_v61  ;;  %p1704_p0 = scmp.ne.s32.totalorder %s1702_s29, %s1703_s20  ;;  %p1709_p4 = scmp.lt.s32.totalorder %s1707_s22, %s1703_s20 }
  0x5f   : > { %989 = vmatpush.msrb.mxu0 %v961_v62  ;;  %p1705_p1 = pnand %p1704_p0, %p1922_p5  ;;  %p1710_p7 = por %p1709_p4, %p1708_p3 }
  0x61   : > { %990 = vmatpush.msrb.mxu0 %v960_v63  ;;  %p1706_p2 = pneg %p1705_p1 }
  0x63   : > { %p1711_p8 = pnand %p1710_p7, %p1706_p2 }
  0xc1   : > { %v746_v19 = vpop.permute.xlu1 %745 }
  0xc2   : > { %v751_v20 = vmul.f32 %v1439_v17, %v746_v19  ;;  %v1040_v17 = vld [vmem:[%s2176_s17 + $0x30] sm:$0xff]  ;;  %v1038_v19 = vld [vmem:[%s2176_s17 + $0x20] sm:$0xff] }
  0xc3   : > { %v828_v21 = vpop.permute.xlu0 %827  ;;  %1054 = vmatpush.msrb.mxu3 %v1040_v17 }
  0xc4   : > { %1301 = vmatmul.msk.f32.vlgmr.msra.gmra.mxu2 %vm799_vm3, %v828_v21  ;;  %v756_v22 = vadd.f32 %v1440_v18, %v751_v20  ;;  %v1039_v18 = vld [vmem:[%s2176_s17 + $0x28] sm:$0xff]  ;;  %v1445_v20 = vld [vmem:[%s2173_s14] ss:$0 sm:$0xff] }
  0xc5   : > { %1020 = vmatpush.msra.mxu2 %v1004_v0  ;;  %1055 = vmatpush.msrb.mxu3 %v1039_v18 }
  0xc6   : > { %v757_v23 = vmax.f32 %v756_v22, 0.0 }
  0xc7   : > { %1021 = vmatpush.msra.mxu2 %v1003_v1  ;;  %1056 = vmatpush.msrb.mxu3 %v1038_v19 }
  0xc8   : > { %1296 = vmatmul.msk.f32.vlgmr.msra.gmra.mxu0 %vm764_vm4, %v757_v23 }
  0xc9   : > { %1022 = vmatpush.msra.mxu2 %v1002_v2  ;;  %1057 = vmatpush.msrb.mxu3 %v1037_v25 }
  0xcb   : > { %v798_v24 = vpop.permute.xlu0 %797  ;;  %1023 = vmatpush.msra.mxu2 %v1001_v5  ;;  %1058 = vmatpush.msrb.mxu3 %v1036_v26 }
  0xcc   : > { %1299 = vmatmul.msk.f32.vlgmr.msra.gmra.mxu1 %vm799_vm3, %v798_v24 }
  0xcd   : > { %1024 = vmatpush.msra.mxu2 %v1000_v12  ;;  %1059 = vmatpush.msrb.mxu3 %v1035_v27 }
  0xcf   : > { %1025 = vmatpush.msra.mxu2 %v999_v13  ;;  %1060 = vmatpush.msrb.mxu3 %v1034_v28 }
  0xd1   : > { %1026 = vmatpush.msra.mxu2 %v998_v14 }
  0xd3   : > { %1027 = vmatpush.msra.mxu2 %v997_v15 }
 0x145   : > { %v785_v37 = vpop.f32.mrf.mxu0 }
 0x146   : > { %v786_v38 = vadd.f32 %v1442_v36, %v785_v37 }
 0x147   : > { %v851_v41 = vpop.f32.mrf.mxu2 }
 0x148   : > { %v788_v40 = vadd.f32 %v786_v38, %v757_v23 }
 0x149   : > { %v823_v42 = vpop.f32.mrf.mxu1 }
 0x14a   : > { %v852_v43 = vadd.f32 %v851_v41, %v823_v42  ;;  %v789_v44 = vmax.f32 %v788_v40, 0.0 }
 0x14c   : > { %v858_v45 = vadd.f32 %v1441_v39, %v852_v43  ;;  %1304 = vmatmul.msk.f32.vlgmr.msrb.gmra.mxu2 %vm764_vm4, %v789_v44 }
 0x14e   : > { %v859_v46 = vmax.f32 %v858_v45, 0.0 }
 0x150   : > { %1302 = vmatmul.msk.f32.vlgmr.msra.gmra.mxu3 %vm872_vm5, %v859_v46 }
 0x1cf   : > { %v951_v7 = vpop.f32.mrf.mxu2 }
 0x1d3   : > { %v893_v56 = vpop.f32.mrf.mxu3 }
 0x1d4   : > { %v894_v57 = vadd.f32 %v1443_v55, %v893_v56 }
 0x1d6   : > { %v896_v58 = vadd.f32 %v894_v57, %v859_v46 }
 0x1d8   : > { %v897_v59 = vmax.f32 %v896_v58, 0.0 }
 0x1da   : > { %1303 = vmatmul.msk.f32.vlgmr.msrb.gmra.mxu1 %vm872_vm5, %v897_v59 }
 0x257   : > { %v928_v8 = vpop.f32.mrf.mxu1 }
 0x258   : > { %v952_v9 = vadd.f32 %v951_v7, %v928_v8 }
 0x25a   : > { %v958_v10 = vadd.f32 %v1444_v6, %v952_v9 }
 0x25c   : > { %v959_v11 = vmax.f32 %v958_v10, 0.0 }
 0x25e   : > { %1305 = vmatmul.msk.f32.vlgmr.msrb.gmra.mxu0 %vm872_vm5, %v959_v11 }
 0x2db   : > { %v992_v21 = vpop.f32.mrf.mxu0 }
 0x2dc   : > { %v993_v22 = vadd.f32 %v1445_v20, %v992_v21 }
 0x2de   : > { %v995_v23 = vadd.f32 %v993_v22, %v959_v11 }
 0x2e0   : > { %v996_v24 = vmax.f32 %v995_v23, 0.0 }
 0x2e2   : > { %1306 = vmatmul.msk.f32.vlgmr.msra.gmra.mxu2 %vm872_vm5, %v996_v24 }
 0x365   : > { %v1029_v30 = vpop.f32.mrf.mxu2 }
 0x366   : > { %v1030_v31 = vadd.f32 %v1446_v29, %v1029_v30 }
 0x368   : > { %v1032_v32 = vadd.f32 %v1030_v31, %v996_v24 }
 0x36a   : > { %v1033_v33 = vmax.f32 %v1032_v32, 0.0 }
 0x36c   : > { %v1067_v34 = vsel %vm737_vm1, %v1033_v33, 0.0  ;;  %1307 = vmatmul.msk.f32.vlgmr.msrb.gmra.mxu3 %vm872_vm5, %v1033_v33 }
 0x36d   : > { %v1068_v35 = vsel %vm872_vm5, %v1067_v34, 0.0  ;;  %v1075_v36 = vmul.f32 %v1067_v34, %v1067_v34 }
 0x36e   : > { %v1069_v37 = vrot.slane %v1068_v35, 4 }
 0x36f   : > { %v1076_v38 = vsel %vm872_vm5, %v1075_v36, 0.0 }
 0x370   : > { %v1070_v39 = vadd.f32 %v1069_v37, %v1068_v35  ;;  %v1077_v40 = vrot.slane %v1076_v38, 4 }
 0x372   : > { %v1071_v41 = vrot.slane %v1070_v39, 2  ;;  %v1078_v42 = vadd.f32 %v1077_v40, %v1076_v38 }
 0x374   : > { %v1072_v43 = vadd.f32 %v1071_v41, %v1070_v39  ;;  %v1079_v44 = vrot.slane %v1078_v42, 2 }
 0x376   : > { %v1073_v4 = vrot.slane %v1072_v43, 1  ;;  %v1080_v45 = vadd.f32 %v1079_v44, %v1078_v42 }
 0x378   : > { %v1081_v46 = vrot.slane %v1080_v45, 1  ;;  %v1074_v47 = vadd.f32 %v1073_v4, %v1072_v43 }
 0x37a   : > { %v1082_v48 = vadd.f32 %v1081_v46, %v1080_v45 }
 0x37c   : > { %v1084_v49 = vsel %vm1083_vm6, %v1074_v47, %v1082_v48 }
 0x37d   : > { %1086 = vst.msk [vmem:[%s723_s19] sm:$0x3] %vm1085_vm7, %v1084_v49 }
 0x37e   : > { %1714 = shalt.err (!%p1711_p8)
}
 0x37f   : > { %1344 = dma.vmem_to_hbm [thread:$0]  (%p1922_p5), %s1108_s7, 32, %s1110_s18, %s1092_s1   ;;  %vm1065_vm8 = vcmask 48128  }
 0x380   : > { %s2218_s19 = sld [smem:[#allocation37_spill]] }
 0x386   : > { %s731_s4 = scalar_lea.vmem %s2218_s19, %s1293_s27 }
 0x3ef   : > { %v1062_v3 = vpop.f32.mrf.mxu3 }
 0x3f0   : > { %1066 = vst.msk [vmem:[%s731_s4] sm:$0xff] %vm1065_vm8, %v1062_v3 }
 0x3f1 PF: > { %s2219_s16 = sld [smem:[#allocation25_spill]] }
 0x3f2   : > { %s2220_s3 = sld [smem:[#allocation23_spill]] }
 0x3f7   : > { %p1391_p9 = scmp.ge.s32.totalorder %s2219_s16, 2 }
 0x3f8   : > { %s1128_s20 = sand.u32 1, %s2220_s3  }
 0x3f9   : > { %p1372_p10 = pnand %p1391_p9, %p1926_p6  ;;  %s1129_s25 = scalar_lea.sflag [#allocation4], %s1128_s20 }
 0x3fb   : > { %p1373_p11 = pneg %p1372_p10 }
 0x3fd   : > { %1752 = dma.done.wait (%p1373_p11), %s1129_s25, 32  }
 0x3fe   : > { %1754 = vsyncadd (%p1373_p11), %s1129_s25, 4294967264  ;;  %s2222_s21 = sld [smem:[#allocation26_spill]]  ;;  %s2225_s0 = smov %s1761_s30 }
 0x3ff   : > { %s2223_s7 = sld [smem:[#allocation24_spill]] }
 0x400   : > { %s2224_s20 = sld [smem:[#allocation27_spill]] }
 0x404   : > { %p35_p5 = scmp.ge.s32.totalorder %s2222_s21, 5  }
 0x405   : > { %s2226_s30 = smov %s2223_s7 }
 0x406   :  { %37 = sbr.rel (!%p35_p5) target bundleno = 18 (0x12), region = 172 }
 0x40b   :  { %1135 = vsyncpa [#allocation3], 1 }
 0x40c   :  { %1137 = vsyncpa [#allocation3 + $0x1], 1 }
 0x40d   :  { %1138 = vsyncpa [#allocation6], 1 }
 0x40e   :  { %1139 = vsyncpa [#allocation9], 1 }
 0x40f   :  { %1140 = vsyncpa [#allocation12], 1 }
 0x410   :  { %1141 = vsyncpa [#allocation15], 1 }
 0x411   :  { %1142 = vsyncpa [#allocation4], 1 }
 0x412   :  { %1144 = vsyncpa [#allocation4 + $0x1], 1 }

</bundles_post_ra>
